<compile_context>
chip_gen: v6e
topology: v6e:2x2x1
jax: 0.10.0
libtpu: 0.0.40
codegen_flags: <defaults>
</compile_context>

<pallas_src>
import functools

import jax
import jax.numpy as jnp
from jax.experimental import pallas as pl
from jax.experimental.pallas import tpu as pltpu


def _round_up(x, m):
    return (x + m - 1) // m * m


# ----------------------------------------------------------------------------
# Pallas kernels
# ----------------------------------------------------------------------------
def _matmul_bias_fullk_kernel(a_ref, b_ref, bias_ref, o_ref, *, apply_relu):
    """One dot per (i,j) tile: bf16 x bf16 -> f32, fused bias (+ ReLU)."""
    acc = jnp.dot(a_ref[...], b_ref[...], preferred_element_type=jnp.float32)
    out = acc + bias_ref[...]                       # (tm,tn) + (1,tn) broadcast
    if apply_relu:
        out = jnp.maximum(out, 0.0)
    o_ref[...] = out.astype(o_ref.dtype)


def _matmul_bias_ktiled_kernel(a_ref, b_ref, bias_ref, o_ref, acc_ref, *,
                               apply_relu):
    """K-tiled accumulation (used only for very large K, e.g. FC1 K=40960)."""
    @pl.when(pl.program_id(2) == 0)
    def _init():
        acc_ref[...] = jnp.zeros_like(acc_ref)

    acc_ref[...] += jnp.dot(a_ref[...], b_ref[...],
                            preferred_element_type=jnp.float32)

    @pl.when(pl.program_id(2) == pl.num_programs(2) - 1)
    def _finalize():
        out = acc_ref[...] + bias_ref[...]
        if apply_relu:
            out = jnp.maximum(out, 0.0)
        o_ref[...] = out.astype(o_ref.dtype)


def _maxpool_kernel(a_ref, b_ref, c_ref, d_ref, o_ref):
    """Elementwise max over the four 2x2-window slices (all lane-dense)."""
    o_ref[...] = jnp.maximum(jnp.maximum(a_ref[...], b_ref[...]),
                             jnp.maximum(c_ref[...], d_ref[...]))


# ----------------------------------------------------------------------------
# Pallas wrappers
# ----------------------------------------------------------------------------
def matmul_bias(a, b_packed, bias_packed, n_out, *, relu, out_dtype,
                tm_max=256, single_tile_m_limit=512, full_k_limit=8192,
                tk=2048):
    """(M,K) @ (K,Np) + bias[1,Np] (optional ReLU), returns (M, n_out).

    b_packed / bias_packed are pre-packed at init: bf16 / f32, Np = ceil128(N).
    Only A's M remainder is padded per call (cheap); K is never padded
    (full-K blocks use the `block dim == array dim` exception).
    """
    M, K = a.shape
    Kb, Np = b_packed.shape
    assert K == Kb

    a = a.astype(jnp.bfloat16)
    Mp0 = _round_up(M, 16)                 # bf16 min sublane tile
    # Single M tile when small (avoids padding waste, e.g. M=288 for c4);
    # otherwise 256-row tiles (divides the large conv M = N*Ho*Wo exactly).
    tm = Mp0 if Mp0 <= single_tile_m_limit else tm_max
    Mp = _round_up(M, tm)
    if Mp != M:
        a = jnp.pad(a, ((0, Mp - M), (0, 0)))
    tn = 256 if Np % 256 == 0 else 128

    if K <= full_k_limit:
        # Full-K: purely "parallel" grid, no accumulator, no K padding.
        kernel = functools.partial(_matmul_bias_fullk_kernel, apply_relu=relu)
        out = pl.pallas_call(
            kernel,
            out_shape=jax.ShapeDtypeStruct((Mp, Np), out_dtype),
            grid_spec=pltpu.PrefetchScalarGridSpec(
                num_scalar_prefetch=0,
                grid=(Mp // tm, Np // tn),
                in_specs=[
                    pl.BlockSpec((tm, K), lambda i, j: (i, 0)),
                    pl.BlockSpec((K, tn), lambda i, j: (0, j)),
                    pl.BlockSpec((1, tn), lambda i, j: (0, j)),
                ],
                out_specs=pl.BlockSpec((tm, tn), lambda i, j: (i, j)),
            ),
            compiler_params=pltpu.CompilerParams(
                dimension_semantics=("parallel", "parallel")),
        )(a, b_packed, bias_packed)
    else:
        # K-tiled accumulator path (FC1).  Only the "arbitrary" K axis has
        # extent > 1 at small batch, so it runs on one TensorCore; at ~10 MB
        # of bf16 weight that is only a few microseconds -- accepted.
        assert K % tk == 0
        kernel = functools.partial(_matmul_bias_ktiled_kernel, apply_relu=relu)
        out = pl.pallas_call(
            kernel,
            out_shape=jax.ShapeDtypeStruct((Mp, Np), out_dtype),
            grid_spec=pltpu.PrefetchScalarGridSpec(
                num_scalar_prefetch=0,
                grid=(Mp // tm, Np // tn, K // tk),
                in_specs=[
                    pl.BlockSpec((tm, tk), lambda i, j, k: (i, k)),
                    pl.BlockSpec((tk, tn), lambda i, j, k: (k, j)),
                    pl.BlockSpec((1, tn), lambda i, j, k: (0, j)),
                ],
                out_specs=pl.BlockSpec((tm, tn), lambda i, j, k: (i, j)),
                scratch_shapes=[pltpu.VMEM((tm, tn), jnp.float32)],
            ),
            compiler_params=pltpu.CompilerParams(
                dimension_semantics=("parallel", "parallel", "arbitrary")),
        )(a, b_packed, bias_packed)

    return out[:M, :n_out]


def _im2col_nhwc(x, kh, kw, pad):
    """NHWC patches -> (N*Ho*Wo, kh*kw*C) with (kh,kw,C) feature ordering."""
    # TODO(synk): longer-term, fuse im2col into the matmul kernel (shifted
    # accumulation) to avoid materializing kh*kw-inflated patches in HBM.
    N, H, W, C = x.shape
    xp = jnp.pad(x, ((0, 0), (pad, pad), (pad, pad), (0, 0)))
    Ho = H + 2 * pad - kh + 1
    Wo = W + 2 * pad - kw + 1
    slices = []
    for i in range(kh):
        for j in range(kw):
            slices.append(xp[:, i:i + Ho, j:j + Wo, :])   # (N,Ho,Wo,C)
    patches = jnp.stack(slices, axis=3)                   # (N,Ho,Wo,kh*kw,C)
    return patches.reshape(N * Ho * Wo, kh * kw * C), Ho, Wo


def conv2d_relu(x_nhwc, layer):
    """Conv2d(stride=1) + ReLU via im2col + Pallas matmul.  NHWC in / NHWC out."""
    N = x_nhwc.shape[0]
    patches, Ho, Wo = _im2col_nhwc(x_nhwc, layer["kh"], layer["kw"], layer["pad"])
    out = matmul_bias(patches, layer["w"], layer["b"], layer["n_out"],
                      relu=True, out_dtype=jnp.bfloat16)
    return out.reshape(N, Ho, Wo, layer["n_out"])


def maxpool2x2_nhwc(x):
    """F.max_pool2d(x, 2, 2) on NHWC input; reduction in a Pallas kernel."""
    N, H, W, C = x.shape
    Ho, Wo = H // 2, W // 2
    rows = N * Ho * Wo
    xr = x.reshape(N, Ho, 2, Wo, 2, C)
    parts = [xr[:, :, i, :, j, :].reshape(rows, C)
             for i in range(2) for j in range(2)]
    # Row-tiled so the kernel scales with batch size; small cases use one tile.
    if rows % 512 == 0:
        tr = 512
    elif rows % 256 == 0:
        tr = 256
    else:
        tr = rows
    spec = pl.BlockSpec((tr, C), lambda i: (i, 0))
    out = pl.pallas_call(
        _maxpool_kernel,
        out_shape=jax.ShapeDtypeStruct((rows, C), x.dtype),
        grid_spec=pltpu.PrefetchScalarGridSpec(
            num_scalar_prefetch=0,
            grid=(rows // tr,),
            in_specs=[spec, spec, spec, spec],
            out_specs=spec,
        ),
        compiler_params=pltpu.CompilerParams(
            dimension_semantics=("parallel",)),
    )(*parts)
    return out.reshape(N, Ho, Wo, C)


# ----------------------------------------------------------------------------
# Parameters (PyTorch layout) and one-time packing into kernel layout
# ----------------------------------------------------------------------------
def init_params(key):
    def xavier_uniform(k, shape):
        o, c, kh, kw = shape
        fan_in, fan_out = c * kh * kw, o * kh * kw
        bound = (6.0 / (fan_in + fan_out)) ** 0.5
        return jax.random.uniform(k, shape, jnp.float32, -bound, bound)

    def bias_init(k, out_features, fan_in):
        bound = 1.0 / (fan_in ** 0.5)
        return jax.random.uniform(k, (out_features,), jnp.float32, -bound, bound)

    ks = jax.random.split(key, 12)
    p = {}
    p["c1_w"] = xavier_uniform(ks[0], (32, 3, 11, 11))
    p["c1_b"] = bias_init(ks[1], 32, 3 * 11 * 11)
    p["c2_w"] = xavier_uniform(ks[2], (64, 32, 7, 7))
    p["c2_b"] = bias_init(ks[3], 64, 32 * 7 * 7)
    p["c3_w"] = xavier_uniform(ks[4], (128, 64, 5, 5))
    p["c3_b"] = bias_init(ks[5], 128, 64 * 5 * 5)
    p["c4_w"] = xavier_uniform(ks[6], (256, 128, 5, 5))
    p["c4_b"] = bias_init(ks[7], 256, 128 * 5 * 5)
    p["c5_w"] = xavier_uniform(ks[8], (2560, 256, 5, 5))
    p["c5_b"] = bias_init(ks[9], 2560, 256 * 5 * 5)
    # F1 / F2 weights are zero-initialized in the PyTorch module; biases default.
    p["f1_w"] = jnp.zeros((128, 40960), jnp.float32)
    p["f1_b"] = bias_init(ks[10], 128, 40960)
    p["f2_w"] = jnp.zeros((10, 128), jnp.float32)
    p["f2_b"] = bias_init(ks[11], 10, 128)
    return p


def pack_params(p):
    """One-time packing: bf16 (K, Np) weights, f32 (1, Np) biases, Np=ceil128."""
    def pack_conv(w, b, pad):
        O, C, kh, kw = w.shape
        Np = _round_up(O, 128)
        wmat = w.transpose(2, 3, 1, 0).reshape(kh * kw * C, O)   # (kh,kw,C)->O
        wmat = jnp.pad(wmat, ((0, 0), (0, Np - O))).astype(jnp.bfloat16)
        bias = jnp.pad(b.astype(jnp.float32), (0, Np - O)).reshape(1, Np)
        return dict(w=wmat, b=bias, n_out=O, kh=kh, kw=kw, pad=pad)

    packed = {
        "c1": pack_conv(p["c1_w"], p["c1_b"], 5),
        "c2": pack_conv(p["c2_w"], p["c2_b"], 3),
        "c3": pack_conv(p["c3_w"], p["c3_b"], 2),
        "c4": pack_conv(p["c4_w"], p["c4_b"], 0),
        "c5": pack_conv(p["c5_w"], p["c5_b"], 0),
    }
    # F1 weight expects PyTorch's NCHW flatten order (C,H,W); our features are
    # NHWC-flattened (H,W,C), so permute the weight accordingly at init.
    f1 = p["f1_w"].reshape(128, 2560, 4, 4).transpose(0, 2, 3, 1).reshape(128, 40960)
    packed["f1"] = dict(w=f1.T.astype(jnp.bfloat16),
                        b=p["f1_b"].astype(jnp.float32).reshape(1, 128),
                        n_out=128)
    Np2 = 128
    f2 = jnp.pad(p["f2_w"].T, ((0, 0), (0, Np2 - 10))).astype(jnp.bfloat16)
    packed["f2"] = dict(w=f2,
                        b=jnp.pad(p["f2_b"].astype(jnp.float32),
                                  (0, Np2 - 10)).reshape(1, Np2),
                        n_out=10)
    return packed


# ----------------------------------------------------------------------------
# Model
# ----------------------------------------------------------------------------
def features(x_nchw, pk):
    x = jnp.transpose(x_nchw, (0, 2, 3, 1)).astype(jnp.bfloat16)   # NHWC bf16
    x = conv2d_relu(x, pk["c1"])       # (N, 32, 32,   32)
    x = conv2d_relu(x, pk["c2"])       # (N, 32, 32,   64)
    x = conv2d_relu(x, pk["c3"])       # (N, 32, 32,  128)
    x = maxpool2x2_nhwc(x)             # (N, 16, 16,  128)
    x = conv2d_relu(x, pk["c4"])       # (N, 12, 12,  256)
    x = conv2d_relu(x, pk["c5"])       # (N,  8,  8, 2560)
    x = maxpool2x2_nhwc(x)             # (N,  4,  4, 2560)
    # TODO(synk): nn.Dropout(0.5) is created fresh inside forward (training-mode
    # random drop in PyTorch); treated as identity here (eval semantics).
    # NHWC flatten; F1 weight was permuted at init to match PyTorch semantics.
    return x.reshape(x.shape[0], -1)   # (N, 40960)


def forward(x_nchw, pk):
    f = features(x_nchw, pk)
    h = matmul_bias(f, pk["f1"]["w"], pk["f1"]["b"], pk["f1"]["n_out"],
                    relu=True, out_dtype=jnp.bfloat16)              # (N, 128)
    return matmul_bias(h, pk["f2"]["w"], pk["f2"]["b"], pk["f2"]["n_out"],
                       relu=False, out_dtype=jnp.float32)           # (N, 10)


# ----------------------------------------------------------------------------
# Pure-JAX reference (emulates the same bf16-input / f32-accum numerics)
# ----------------------------------------------------------------------------
def _ref_conv(x_nhwc, w, b, pad):
    y = jax.lax.conv_general_dilated(
        x_nhwc.astype(jnp.bfloat16), w.astype(jnp.bfloat16), (1, 1),
        [(pad, pad), (pad, pad)],
        dimension_numbers=("NHWC", "OIHW", "NHWC"),
        preferred_element_type=jnp.float32)
    return jnp.maximum(y + b[None, None, None, :], 0.0).astype(jnp.bfloat16)


def _ref_pool(x):
    N, H, W, C = x.shape
    return jnp.max(x.reshape(N, H // 2, 2, W // 2, 2, C), axis=(2, 4))


def ref_features(x_nchw, p):
    x = jnp.transpose(x_nchw, (0, 2, 3, 1)).astype(jnp.bfloat16)
    x = _ref_conv(x, p["c1_w"], p["c1_b"], 5)
    x = _ref_conv(x, p["c2_w"], p["c2_b"], 3)
    x = _ref_conv(x, p["c3_w"], p["c3_b"], 2)
    x = _ref_pool(x)
    x = _ref_conv(x, p["c4_w"], p["c4_b"], 0)
    x = _ref_conv(x, p["c5_w"], p["c5_b"], 0)
    x = _ref_pool(x)
    return x.reshape(x.shape[0], -1)


# ----------------------------------------------------------------------------
if __name__ == "__main__":
    key = jax.random.PRNGKey(0)
    k_param, k_x, k_a, k_b = jax.random.split(key, 4)
    params = init_params(k_param)
    packed = pack_params(params)

    # Forward implies CIFAR-10 inputs: 3x32x32 (flatten size 2560*4*4 = 40960).
    x = jax.random.normal(k_x, (2, 3, 32, 32), jnp.float32)

    logits = jax.block_until_ready(forward(x, packed))
    assert logits.shape == (2, 10)
    assert bool(jnp.all(jnp.isfinite(logits)))

    # Correctness of the Pallas conv/pool pipeline vs a bf16-emulating JAX ref.
    feat_pallas = jax.block_until_ready(features(x, packed)).astype(jnp.float32)
    feat_ref = jax.block_until_ready(ref_features(x, params)).astype(jnp.float32)
    rel_err = float(jnp.max(jnp.abs(feat_pallas - feat_ref)) /
                    (jnp.max(jnp.abs(feat_ref)) + 1e-6))
    assert rel_err < 2e-2, f"feature mismatch, rel_err={rel_err}"

    # Validate the K-tiled (FC1-sized) matmul path with non-zero weights.
    a_chk = jax.random.normal(k_a, (2, 40960), jnp.float32).astype(jnp.bfloat16)
    b_chk = (0.01 * jax.random.normal(k_b, (40960, 128), jnp.float32)
             ).astype(jnp.bfloat16)
    bias_chk = jnp.zeros((1, 128), jnp.float32)
    y = matmul_bias(a_chk, b_chk, bias_chk, 128, relu=False,
                    out_dtype=jnp.float32)
    y_ref = jnp.dot(a_chk, b_chk, preferred_element_type=jnp.float32)
    rel2 = float(jnp.max(jnp.abs(y - y_ref)) / (jnp.max(jnp.abs(y_ref)) + 1e-6))
    assert rel2 < 1e-3, f"fc matmul mismatch, rel_err={rel2}"

    print("KERNEL_OK")
</pallas_src>

<mosaic_0001>
module attributes {stable_mosaic.version = 11 : i64} {
  func.func @_matmul_bias_fullk_kernel(%arg0: i32, %arg1: i32, %arg2: memref<256x363xbf16, #tpu.memory_space<vmem>>, %arg3: memref<363x128xbf16, #tpu.memory_space<vmem>>, %arg4: memref<1x128xf32, #tpu.memory_space<vmem>>, %arg5: memref<256x128xbf16, #tpu.memory_space<vmem>>) attributes {dimension_semantics = [#tpu.dimension_semantics<parallel>, #tpu.dimension_semantics<parallel>], iteration_bounds = array<i64: 8, 1>, scalar_prefetch = 0 : i64, scratch_operands = 0 : i64, tpu.core_type = #tpu.core_type<tc>, window_params = [{transform_indices = @transform_0, window_bounds = array<i64: 256, 363>}, {transform_indices = @transform_1, window_bounds = array<i64: 363, 128>}, {transform_indices = @transform_2, window_bounds = array<i64: 1, 128>}, {transform_indices = @transform_3, window_bounds = array<i64: 256, 128>}]} {
    %c0 = arith.constant 0 : index
    %c0_0 = arith.constant 0 : index
    %0 = vector.load %arg2[%c0, %c0_0] : memref<256x363xbf16, #tpu.memory_space<vmem>>, vector<256x363xbf16>
    %c0_1 = arith.constant 0 : index
    %c0_2 = arith.constant 0 : index
    %1 = vector.load %arg3[%c0_1, %c0_2] : memref<363x128xbf16, #tpu.memory_space<vmem>>, vector<363x128xbf16>
    %cst = arith.constant dense<0.000000e+00> : vector<256x128xf32>
    %2 = tpu.matmul %0, %1, %cst {dimension_numbers = #tpu.dot_dimension_numbers<[1], [0], [0], [1], [0, 0, 1, 1], [], []>} : vector<256x363xbf16>, vector<363x128xbf16>, vector<256x128xf32> -> vector<256x128xf32>
    %c0_3 = arith.constant 0 : index
    %c0_4 = arith.constant 0 : index
    %3 = vector.load %arg4[%c0_3, %c0_4] : memref<1x128xf32, #tpu.memory_space<vmem>>, vector<1x128xf32>
    %4 = vector.broadcast %3 : vector<1x128xf32> to vector<256x128xf32>
    %5 = arith.addf %2, %4 : vector<256x128xf32>
    %cst_5 = arith.constant 0.000000e+00 : f32
    %6 = vector.broadcast %cst_5 : f32 to vector<256x128xf32>
    %7 = arith.maximumf %5, %6 : vector<256x128xf32>
    %8 = arith.truncf %7 : vector<256x128xf32> to vector<256x128xbf16>
    %c0_6 = arith.constant 0 : index
    %c0_7 = arith.constant 0 : index
    %9 = vector.load %arg5[%c0_6, %c0_7] : memref<256x128xbf16, #tpu.memory_space<vmem>>, vector<256x128xbf16>
    tpu.vector_store %arg5[%c0_6, %c0_7], %8 {strides = array<i32>} : memref<256x128xbf16, #tpu.memory_space<vmem>>, vector<256x128xbf16>,
    return
  }
  func.func @transform_0(%arg0: i32, %arg1: i32) -> (i32, i32) {
    %c0_i32 = arith.constant 0 : i32
    %c0_i32_0 = arith.constant 0 : i32
    return %arg0, %c0_i32 : i32, i32
  }
  func.func @transform_1(%arg0: i32, %arg1: i32) -> (i32, i32) {
    %c0_i32 = arith.constant 0 : i32
    %c0_i32_0 = arith.constant 0 : i32
    return %c0_i32, %arg1 : i32, i32
  }
  func.func @transform_2(%arg0: i32, %arg1: i32) -> (i32, i32) {
    %c0_i32 = arith.constant 0 : i32
    %c0_i32_0 = arith.constant 0 : i32
    return %c0_i32, %arg1 : i32, i32
  }
  func.func @transform_3(%arg0: i32, %arg1: i32) -> (i32, i32) {
    %c0_i32 = arith.constant 0 : i32
    return %arg0, %arg1 : i32, i32
  }
}

</mosaic_0001>

<bundles_post_ra>
// kernel: tpu_custom_call.1
= control target key start
LH: loop header
LB: loop body
LE: loop exit
PB: predicated region body
PF: predicated region fallthrough
CT: control target
= control target key end

     0   :  { %8 = vsyncpa [#allocation3], 0  ;;  %s2451_s0 = inlined_call_operand.vmem [shape: bf16[2048,363], index: 0, kind: input, shape index: {}]   ;;  %s2452_s1 = inlined_call_operand.vmem [shape: bf16[363,128], index: 1, kind: input, shape index: {}]   ;;  %s2453_s2 = inlined_call_operand.vmem [shape: f32[1,128], index: 2, kind: input, shape index: {}]   ;;  %s2454_s3 = inlined_call_operand.hbm [shape: bf16[2048,128], index: 3, kind: output, shape index: {}]  }
   0x1   :  { %10 = vsyncpa [#allocation3 + $0x1], 0  ;;  %s2107_s12 = smov 0   ;;  %s2109_s13 = smov 0  }
   0x2   :  { %s2111_s14 = smov 0   ;;  %s2113_s15 = smov 0  }
   0x3   :  { %s2115_s16 = smov 0   ;;  %s2117_s17 = smov 0  }
   0x4 LB: > { %s1399_s18 = sadd.s32 4294967295, %s2081_s17   ;;  %s1400_s19 = sadd.s32 4294967294, %s2081_s17   ;;  %s2081_s17 = sphi %s2117_s17, %s16_s17   ;;  %s2077_s16 = sphi %s2115_s16, %s2461_s16   ;;  %s2073_s15 = sphi %s2113_s15, %s2460_s15   ;;  %s2069_s14 = sphi %s2111_s14, %s2459_s14   ;;  %s2065_s13 = sphi %s2109_s13, %s2458_s13   ;;  %s2061_s12 = sphi %s2107_s12, %s2457_s12  }
   0x5   : > { %s28_s20 = sadd.s32 1, %s2077_s16  ;;  %s115_s21 = sadd.s32 1, %s2069_s14 }
   0x6   : > { %p30_p0 = scmp.ge.s32.totalorder %s28_s20, 8  ;;  %p125_p1 = scmp.ne.s32.totalorder %s2069_s14, %s2065_s13 }
   0x7   : > { %p126_p2 = scmp.eq.s32.totalorder %s1399_s18, 7  ;;  %p131_p3 = scmp.ne.s32.totalorder %s2065_s13, %s2061_s12 }
   0x8   : > { %s2463_s20 = smov (%p30_p0, %s28_s20), 0  ;;  %p132_p5 = scmp.eq.s32.totalorder %s1400_s19, 7 }
   0x9   : > { %p2147_p4 = por %p126_p2, %p125_p1  ;;  %s110_s23 = ssub.s32 %s2077_s16, %s2463_s20 }
   0xa   : > { %p1405_p6 = scmp.ge.s32.totalorder %s2081_s17, 1  ;;  %p113_p7 = scmp.eq.s32.totalorder %s110_s23, 0 }
   0xb   : > { %p2154_p8 = por %p132_p5, %p131_p3  ;;  %p173_p9 = scmp.lt.s32.totalorder %s2081_s17, 9 }
   0xc   : > { %s2160_s25 = scalar_select %p113_p7, %s2069_s14, %s115_s21  }
   0xd   : > { %p174_p10 = pnand %p1405_p6, %p173_p9 }
   0xe   : > { %s1407_s28 = sshll.u32 (!%p174_p10), %s2073_s15, 5  ;;  %s202_s29 = sand.u32 (!%p174_p10), 1, %s2065_s13  }
   0xf   : > { %177 = sbr.rel (%p174_p10) target bundleno = 364 (0x16c), region = 32  ;;  %p206_p11 = scmp.lt.s32.totalorder (!%p174_p10), %s1407_s28, 255 }
  0x10   : > { %s1406_s30 = sshll.u32 (!%p174_p10), %s202_s29, 7  ;;  %s2406_s10 = scalar_lea.sflag (!%p174_p10), [#allocation3], %s202_s29 }
  0x11   : > { %s2334_s4 = scalar_lea.vmem (!%p174_p10), [#allocation2], %s1406_s30  ;;  %s2084_s11 = smov (!%p174_p10), [#allocation2]  }
  0x12   : > { %s1300_s6 = sshll.u32 (!%p174_p10), %s2334_s4, 4  ;;  %s2009_s18 = sshll.u32 (!%p174_p10), %s2084_s11, 4  ;;  %s2401_s6 = int_to_ptr.vmem [resolvable:$true] %s1300_s6  ;;  %s2010_s18 = int_to_ptr.vmem [resolvable:$false] %s2009_s18 }
  0x13   : > { %s2011_s19 = scalar_lea.vmem (!%p174_p10), %s2010_s18, 4096  ;;  %p2012_p1 = scmp.lt.s32.totalorder (!%p174_p10), %s2401_s6, %s2010_s18 }
  0x14   : > { %v1918_v0 = vld [vmem:[%s2452_s1 + $0x78] sm:$0xff]   ;;  %v1920_v2 = vld [vmem:[%s2452_s1 + $0x70] sm:$0xff]   ;;  %v1922_v4 = vld [vmem:[%s2452_s1 + $0x68] sm:$0xff]   ;;  %s2465_s28 = smov (!%p206_p11, %s1407_s28), 255  ;;  %vm764_vm0 = vcmask 1044480   ;;  %vm765_vm1 = vcmask 1045504  }
  0x15   : > { %v1919_v1 = vld [vmem:[%s2452_s1 + $0x38] sm:$0xff]   ;;  %1662 = vmatprep.subr.bf16.mxu0 %v1918_v0  ;;  %1843 = vmatprep.subr.bf16.mxu1 %v1918_v0  ;;  %v1921_v3 = vld [vmem:[%s2452_s1 + $0x30] sm:$0xff]   ;;  %v1923_v5 = vld [vmem:[%s2452_s1 + $0x28] sm:$0xff]   ;;  %s1859_s21 = smul.u32 12, %s2465_s28  ;;  %v2083_v16 = vmov 65535   ;;  %vm715_vm2 = vcmask 875520  }
  0x16   : > { %1663 = vmatpush3.bf16.msra.mxu0 %v1919_v1  ;;  %1851 = vmatpush3.bf16.msra.mxu1 %v1919_v1  ;;  %v1924_v6 = vld [vmem:[%s2452_s1 + $0x60] sm:$0xff]   ;;  %v1926_v8 = vld [vmem:[%s2452_s1 + $0x58] sm:$0xff]   ;;  %v1928_v10 = vld [vmem:[%s2452_s1 + $0x50] sm:$0xff]   ;;  %v766_v17 = vsel %vm764_vm0, 4294967295, %v2083_v16  ;;  %s1566_s28 = sshll.u32 %s2073_s15, 11  ;;  %s2005_s15 = scalar_lea.vmem %s2401_s6, 2048 }
  0x17   : > { %1664 = vmatprep.subr.bf16.mxu0 %v1920_v2  ;;  %1844 = vmatprep.subr.bf16.mxu1 %v1920_v2  ;;  %v1925_v7 = vld [vmem:[%s2452_s1 + $0x20] sm:$0xff]   ;;  %s2193_s5 = scalar_lea.vmem %s2451_s0, %s1859_s21  ;;  %v1927_v9 = vld [vmem:[%s2452_s1 + $0x18] sm:$0xff]   ;;  %v1929_v13 = vld [vmem:[%s2452_s1 + $0x10] sm:$0xff]   ;;  %v767_v20 = vsel %vm765_vm1, %v766_v17, 0  ;;  %s2399_s9 = scalar_lea.hbm %s2454_s3, %s1566_s28 }
  0x18   : > { %v1936_v11 = vld [vmem:[%s2193_s5 + $0x4] ss:$12 sps:$4 sm:$0xff]   ;;  %v1930_v14 = vld [vmem:[%s2452_s1 + $0x48] sm:$0xff]   ;;  %v1949_v31 = vld [vmem:[%s2193_s5 + $0x34] ss:$12 sps:$4 sm:$0xff]   ;;  %p2006_p12 = scmp.ne.s32.totalorder %s2401_s6, %s2005_s15  ;;  %p2013_p2 = scmp.lt.s32.totalorder %s2011_s19, %s2005_s15 }
  0x19   : > { %v1939_v12 = vld [vmem:[%s2193_s5 + $0x124] ss:$12 sps:$4 sm:$0xff]   ;;  %803 = vmatprep.mubr.bf16.mxu0 %v1936_v11  ;;  %v1931_v15 = vld [vmem:[%s2452_s1 + $0x8] sm:$0xff]   ;;  %v1951_v32 = vld [vmem:[%s2193_s5 + $0x154] ss:$12 sps:$4 sm:$0xff]  }
  0x1a   : > { %1665 = vmatpush3.bf16.msra.mxu0 %v1921_v3  ;;  %1852 = vmatpush3.bf16.msra.mxu1 %v1921_v3  ;;  %v1932_v18 = vld [vmem:[%s2452_s1 + $0x40] sm:$0xff]   ;;  %v1940_v19 = vld [vmem:[%s2452_s1 + $0xb0] sm:$0x3f]   ;;  %v1941_v25 = vld [vmem:[%s2193_s5 + $0x1c] ss:$12 sps:$4 sm:$0xff]   ;;  %p2007_p13 = pnand %p2006_p12, %p2147_p4  ;;  %p2014_p3 = por %p2013_p2, %p2012_p1 }
  0x1b   : > { %1666 = vmatprep.subr.bf16.mxu0 %v1922_v4  ;;  %1845 = vmatprep.subr.bf16.mxu1 %v1922_v4  ;;  %v1933_v21 = vld [vmem:[%s2452_s1] sm:$0xff]   ;;  %v769_v22 = vand.u32 %v1940_v19, %v767_v20  ;;  %v1943_v26 = vld [vmem:[%s2193_s5 + $0x13c] ss:$12 sps:$4 sm:$0xff]   ;;  %v1956_v34 = vld [vmem:[%s2452_s1 + $0x90] sm:$0xff]  }
  0x1c   : > { %899 = vmatprep.mubr.bf16.mxu1 %v1939_v12  ;;  %v1934_v23 = vld [vmem:[%s2193_s5] ss:$12 sps:$4 sm:$0xff]   ;;  %v1945_v28 = vld [vmem:[%s2193_s5 + $0x18] ss:$12 sps:$4 sm:$0xff]   ;;  %v1953_v35 = vld [vmem:[%s2193_s5 + $0x30] ss:$12 sps:$4 sm:$0xff]   ;;  %p2008_p0 = pneg %p2007_p13 }
  0x1d   : > { %v1937_v24 = vld [vmem:[%s2193_s5 + $0x120] ss:$12 sps:$4 sm:$0xff]   ;;  %v1946_v30 = vld [vmem:[%s2193_s5 + $0x138] ss:$12 sps:$4 sm:$0xff]   ;;  %v1954_v36 = vld [vmem:[%s2193_s5 + $0x150] ss:$12 sps:$4 sm:$0xff]  }
  0x1e   : > { %1667 = vmatpush3.bf16.msra.mxu0 %v1923_v5  ;;  %1853 = vmatpush3.bf16.msra.mxu1 %v1923_v5  ;;  %v1947_v27 = vld [vmem:[%s2452_s1 + $0xa8] sm:$0xff]   ;;  %v1948_v29 = vld [vmem:[%s2452_s1 + $0xa0] sm:$0xff]   ;;  %v1955_v33 = vld [vmem:[%s2452_s1 + $0x98] sm:$0xff]   ;;  %p2015_p5 = pnand %p2014_p3, %p2008_p0 }
  0x1f   : > { %1668 = vmatprep.subr.bf16.mxu0 %v1924_v6  ;;  %1846 = vmatprep.subr.bf16.mxu1 %v1924_v6  ;;  %v1957_v37 = vld [vmem:[%s2193_s5 + $0x4c] ss:$12 sps:$4 sm:$0xff]   ;;  %v1964_v40 = vld [vmem:[%s2452_s1 + $0x80] sm:$0xff]   ;;  %v1961_v41 = vld [vmem:[%s2193_s5 + $0x48] ss:$12 sps:$4 sm:$0xff]  }
  0x20   : > { %v1959_v38 = vld [vmem:[%s2193_s5 + $0x16c] ss:$12 sps:$4 sm:$0xff]   ;;  %v1962_v42 = vld [vmem:[%s2193_s5 + $0x168] ss:$12 sps:$4 sm:$0xff]   ;;  %v1965_v43 = vld [vmem:[%s2193_s5 + $0x64] ss:$12 sps:$4 sm:$0xff]  }
  0x21   : > { %v1963_v39 = vld [vmem:[%s2452_s1 + $0x88] sm:$0xff]   ;;  %v1972_v48 = vld [vmem:[%s2193_s5 + $0x38] ss:$12 sps:$4 sm:$0xff]   ;;  %v1974_v50 = vld [vmem:[%s2193_s5 + $0x50] ss:$12 sps:$4 sm:$0xff]  }
  0x22   : > { %1669 = vmatpush3.bf16.msra.mxu0 %v1925_v7  ;;  %1854 = vmatpush3.bf16.msra.mxu1 %v1925_v7  ;;  %v1967_v44 = vld [vmem:[%s2193_s5 + $0x8] ss:$12 sps:$4 sm:$0xff]   ;;  %v1968_v45 = vld [vmem:[%s2193_s5 + $0x60] ss:$12 sps:$4 sm:$0xff]   ;;  %v1973_v49 = vld [vmem:[%s2193_s5 + $0x78] ss:$12 sps:$4 sm:$0xff]  }
  0x23   : > { %1670 = vmatprep.subr.bf16.mxu0 %v1926_v8  ;;  %1847 = vmatprep.subr.bf16.mxu1 %v1926_v8  ;;  %v1969_v46 = vld [vmem:[%s2193_s5 + $0x20] ss:$12 sps:$4 sm:$0xff]   ;;  %v1970_v47 = vld [vmem:[%s2193_s5 + $0x7c] ss:$12 sps:$4 sm:$0xff]   ;;  %v1982_v56 = vld [vmem:[%s2193_s5 + $0x98] ss:$12 sps:$4 sm:$0xff]  }
  0x24   : > { %v1975_v51 = vld [vmem:[%s2193_s5 + $0x94] ss:$12 sps:$4 sm:$0xff]   ;;  %v1978_v53 = vld [vmem:[%s2193_s5 + $0x90] ss:$12 sps:$4 sm:$0xff]   ;;  %v1980_v55 = vld [vmem:[%s2193_s5 + $0xac] ss:$12 sps:$4 sm:$0xff]  }
  0x25   : > { %v1977_v52 = vld [vmem:[%s2193_s5 + $0x68] ss:$12 sps:$4 sm:$0xff]   ;;  %v1979_v54 = vld [vmem:[%s2193_s5 + $0x80] ss:$12 sps:$4 sm:$0xff]   ;;  %v1984_v58 = vld [vmem:[%s2193_s5 + $0xb0] ss:$12 sps:$4 sm:$0xff]  }
  0x26   : > { %1671 = vmatpush3.bf16.msra.mxu0 %v1927_v9  ;;  %1855 = vmatpush3.bf16.msra.mxu1 %v1927_v9  ;;  %v1983_v57 = vld [vmem:[%s2193_s5 + $0xa8] ss:$12 sps:$4 sm:$0xff]   ;;  %v1985_v59 = vld [vmem:[%s2193_s5 + $0xc4] ss:$12 sps:$4 sm:$0xff]   ;;  %v1988_v61 = vld [vmem:[%s2193_s5 + $0xc0] ss:$12 sps:$4 sm:$0xff]  }
  0x27   : > { %1672 = vmatprep.subr.bf16.mxu0 %v1928_v10  ;;  %1848 = vmatprep.subr.bf16.mxu1 %v1928_v10  ;;  %v1987_v60 = vld [vmem:[%s2193_s5 + $0xc8] ss:$12 sps:$4 sm:$0xff]   ;;  %v1989_v62 = vld [vmem:[%s2193_s5 + $0xe0] ss:$12 sps:$4 sm:$0xff]   ;;  %v1992_v0 = vld [vmem:[%s2193_s5 + $0xf8] ss:$12 sps:$4 sm:$0xff]  }
  0x28   : > { %v1990_v63 = vld [vmem:[%s2193_s5 + $0xdc] ss:$12 sps:$4 sm:$0xff]   ;;  %v1993_v1 = vld [vmem:[%s2193_s5 + $0xd8] ss:$12 sps:$4 sm:$0xff]   ;;  %v1995_v3 = vld [vmem:[%s2193_s5 + $0xf4] ss:$12 sps:$4 sm:$0xff]  }
  0x29   : > { %v1994_v2 = vld [vmem:[%s2193_s5 + $0x110] ss:$12 sps:$4 sm:$0xff]   ;;  %v1997_v4 = vld [vmem:[%s2193_s5 + $0x128] ss:$12 sps:$4 sm:$0xff]   ;;  %v1999_v6 = vld [vmem:[%s2193_s5 + $0x140] ss:$12 sps:$4 sm:$0xff]  }
  0x2a   : > { %1673 = vmatpush3.bf16.msra.mxu0 %v1929_v13  ;;  %1856 = vmatpush3.bf16.msra.mxu1 %v1929_v13  ;;  %v1998_v5 = vld [vmem:[%s2193_s5 + $0xf0] ss:$12 sps:$4 sm:$0xff]   ;;  %v2000_v7 = vld [vmem:[%s2193_s5 + $0x10c] ss:$12 sps:$4 sm:$0xff]   ;;  %v2003_v9 = vld [vmem:[%s2193_s5 + $0x108] ss:$12 sps:$4 sm:$0xff]  }
  0x2b   : > { %1674 = vmatprep.subr.bf16.mxu0 %v1930_v14  ;;  %1849 = vmatprep.subr.bf16.mxu1 %v1930_v14  ;;  %v2002_v8 = vld [vmem:[%s2193_s5 + $0x158] ss:$12 sps:$4 sm:$0xff]   ;;  %v2004_v10 = vld [vmem:[%s2193_s5 + $0x170] ss:$12 sps:$4 sm:$0xff]  }
  0x2e   : > { %1675 = vmatpush3.bf16.msra.mxu0 %v1931_v15  ;;  %1857 = vmatpush3.bf16.msra.mxu1 %v1931_v15 }
  0x2f   : > { %1676 = vmatprep.subr.bf16.mxu0 %v1932_v18  ;;  %1850 = vmatprep.subr.bf16.mxu1 %v1932_v18 }
  0x32   : > { %1677 = vmatpush3.bf16.msra.mxu0 %v1933_v21  ;;  %1858 = vmatpush3.bf16.msra.mxu1 %v1933_v21 }
  0x33   : > { %1797 = vmatprep.subr.bf16.mxu1 %v769_v22 }
  0x35   : > { %804 = vmatmul.mubr.bf16.vlgmr.msra.gmra.mxu0 %v1934_v23  ;;  %900 = vmatmul.mubr.bf16.vlgmr.msra.gmra.mxu1 %v1937_v24 }
  0x36   : > { %1798 = vmatpush3.bf16.msra.mxu1 %v769_v22  ;;  %811 = vmatprep.mubr.bf16.mxu0 %v1941_v25 }
  0x37   : > { %907 = vmatprep.mubr.bf16.mxu1 %v1943_v26  ;;  %1799 = vmatprep.subr.bf16.mxu1 %v1947_v27 }
  0x3a   : > { %1800 = vmatpush3.bf16.msra.mxu1 %v1947_v27 }
  0x3b   : > { %1801 = vmatprep.subr.bf16.mxu1 %v1948_v29 }
  0x3d   : > { %812 = vmatmul.mubr.bf16.gmra.mxu0 %v1945_v28  ;;  %908 = vmatmul.mubr.bf16.gmra.mxu1 %v1946_v30 }
  0x3e   : > { %1802 = vmatpush3.bf16.msra.mxu1 %v1948_v29  ;;  %819 = vmatprep.mubr.bf16.mxu0 %v1949_v31 }
  0x3f   : > { %915 = vmatprep.mubr.bf16.mxu1 %v1951_v32  ;;  %1803 = vmatprep.subr.bf16.mxu1 %v1955_v33 }
  0x42   : > { %1804 = vmatpush3.bf16.msra.mxu1 %v1955_v33 }
  0x43   : > { %1805 = vmatprep.subr.bf16.mxu1 %v1956_v34 }
  0x45   : > { %820 = vmatmul.mubr.bf16.gmra.mxu0 %v1953_v35  ;;  %916 = vmatmul.mubr.bf16.gmra.mxu1 %v1954_v36 }
  0x46   : > { %1806 = vmatpush3.bf16.msra.mxu1 %v1956_v34  ;;  %827 = vmatprep.mubr.bf16.mxu0 %v1957_v37 }
  0x47   : > { %923 = vmatprep.mubr.bf16.mxu1 %v1959_v38  ;;  %1807 = vmatprep.subr.bf16.mxu1 %v1963_v39 }
  0x4a   : > { %1808 = vmatpush3.bf16.msra.mxu1 %v1963_v39 }
  0x4b   : > { %1809 = vmatprep.subr.bf16.mxu1 %v1964_v40 }
  0x4d   : > { %828 = vmatmul.mubr.bf16.gmra.mxu0 %v1961_v41  ;;  %924 = vmatmul.mubr.bf16.gmra.mxu1 %v1962_v42 }
  0x4e   : > { %1810 = vmatpush3.bf16.msra.mxu1 %v1964_v40  ;;  %835 = vmatprep.mubr.bf16.mxu0 %v1965_v43 }
  0x4f   : > { %1811 = vmatprep.mubr.msk.bf16.mxu1 %vm715_vm2, %v1967_v44 }
  0x55   : > { %836 = vmatmul.mubr.bf16.gmra.mxu0 %v1968_v45  ;;  %1812 = vmatmul.mubr.msk.bf16.vlgmr.msra.gmra.mxu1 %vm715_vm2, %v1969_v46 }
  0x56   : > { %843 = vmatprep.mubr.bf16.mxu0 %v1970_v47  ;;  %1815 = vmatprep.mubr.msk.bf16.mxu1 %vm715_vm2, %v1972_v48 }
  0x5d   : > { %844 = vmatmul.mubr.bf16.gmra.mxu0 %v1973_v49  ;;  %1816 = vmatmul.mubr.msk.bf16.gmra.mxu1 %vm715_vm2, %v1974_v50 }
  0x5e   : > { %851 = vmatprep.mubr.bf16.mxu0 %v1975_v51  ;;  %1819 = vmatprep.mubr.msk.bf16.mxu1 %vm715_vm2, %v1977_v52 }
  0x65   : > { %852 = vmatmul.mubr.bf16.gmra.mxu0 %v1978_v53  ;;  %1820 = vmatmul.mubr.msk.bf16.gmra.mxu1 %vm715_vm2, %v1979_v54  ;;  %v2324_v53 = vld [vmem:[%s2453_s2] ss:$0 sm:$0xff] }
  0x66   : > { %859 = vmatprep.mubr.bf16.mxu0 %v1980_v55  ;;  %1823 = vmatprep.mubr.msk.bf16.mxu1 %vm715_vm2, %v1982_v56 }
  0x6d   : > { %860 = vmatmul.mubr.bf16.gmra.mxu0 %v1983_v57  ;;  %1824 = vmatmul.mubr.msk.bf16.gmra.mxu1 %vm715_vm2, %v1984_v58 }
  0x6e   : > { %867 = vmatprep.mubr.bf16.mxu0 %v1985_v59  ;;  %1827 = vmatprep.mubr.msk.bf16.mxu1 %vm715_vm2, %v1987_v60 }
  0x75   : > { %868 = vmatmul.mubr.bf16.gmra.mxu0 %v1988_v61  ;;  %1828 = vmatmul.mubr.msk.bf16.gmra.mxu1 %vm715_vm2, %v1989_v62 }
  0x76   : > { %875 = vmatprep.mubr.bf16.mxu0 %v1990_v63  ;;  %1831 = vmatprep.mubr.msk.bf16.mxu1 %vm715_vm2, %v1992_v0 }
  0x7d   : > { %876 = vmatmul.mubr.bf16.gmra.mxu0 %v1993_v1  ;;  %1832 = vmatmul.mubr.msk.bf16.gmra.mxu1 %vm715_vm2, %v1994_v2 }
  0x7e   : > { %883 = vmatprep.mubr.bf16.mxu0 %v1995_v3  ;;  %1835 = vmatprep.mubr.msk.bf16.mxu1 %vm715_vm2, %v1997_v4 }
  0x85   : > { %884 = vmatmul.mubr.bf16.gmra.mxu0 %v1998_v5  ;;  %1836 = vmatmul.mubr.msk.bf16.gmra.mxu1 %vm715_vm2, %v1999_v6 }
  0x86   : > { %891 = vmatprep.mubr.bf16.mxu0 %v2000_v7  ;;  %1839 = vmatprep.mubr.msk.bf16.mxu1 %vm715_vm2, %v2002_v8 }
  0x8d   : > { %892 = vmatmul.mubr.bf16.gmra.mxu0 %v2003_v9  ;;  %1840 = vmatmul.mubr.msk.bf16.gmra.mxu1 %vm715_vm2, %v2004_v10 }
  0xf5   : > { %v1678_v11 = vpop.f32.mrf.mxu0  ;;  %v1750_v12 = vpop.f32.mrf.mxu1 }
  0xf7   : > { %v1679_v13 = vpop.f32.mrf.mxu0  ;;  %v1751_v14 = vpop.f32.mrf.mxu1 }
  0xf8   : > { %v2301_v15 = vadd.f32 %v1751_v14, %v1750_v12  ;;  %v1680_v50 = vadd.f32 %v1679_v13, %v1678_v11 }
  0xf9   : > { %v1681_v16 = vpop.f32.mrf.mxu0  ;;  %v1753_v17 = vpop.f32.mrf.mxu1 }
  0xfa   : > { %v806_v60 = vadd.f32 %v1680_v50, %v2324_v53 }
  0xfb   : > { %v1682_v18 = vpop.f32.mrf.mxu0  ;;  %v1754_v19 = vpop.f32.mrf.mxu1 }
  0xfc   : > { %v2303_v20 = vadd.f32 %v1754_v19, %v1753_v17  ;;  %v1683_v55 = vadd.f32 %v1682_v18, %v1681_v16 }
  0xfd   : > { %v1684_v21 = vpop.f32.mrf.mxu0  ;;  %v1756_v22 = vpop.f32.mrf.mxu1 }
  0xfe   : > { %v809_v3 = vadd.f32 %v1683_v55, %v2324_v53 }
  0xff   : > { %v1685_v23 = vpop.f32.mrf.mxu0  ;;  %v1757_v24 = vpop.f32.mrf.mxu1 }
 0x100   : > { %v2305_v25 = vadd.f32 %v1757_v24, %v1756_v22  ;;  %v1686_v47 = vadd.f32 %v1685_v23, %v1684_v21 }
 0x101   : > { %v1687_v26 = vpop.f32.mrf.mxu0  ;;  %v1759_v27 = vpop.f32.mrf.mxu1 }
 0x102   : > { %v814_v56 = vadd.f32 %v1686_v47, %v2324_v53 }
 0x103   : > { %v1688_v28 = vpop.f32.mrf.mxu0  ;;  %v1760_v29 = vpop.f32.mrf.mxu1 }
 0x104   : > { %v2307_v30 = vadd.f32 %v1760_v29, %v1759_v27  ;;  %v1689_v51 = vadd.f32 %v1688_v28, %v1687_v26 }
 0x105   : > { %v1690_v31 = vpop.f32.mrf.mxu0  ;;  %v1762_v32 = vpop.f32.mrf.mxu1 }
 0x106   : > { %v817_v61 = vadd.f32 %v1689_v51, %v2324_v53 }
 0x107   : > { %v1691_v33 = vpop.f32.mrf.mxu0  ;;  %v1763_v34 = vpop.f32.mrf.mxu1 }
 0x108   : > { %v2309_v35 = vadd.f32 %v1763_v34, %v1762_v32  ;;  %v1692_v4 = vadd.f32 %v1691_v33, %v1690_v31 }
 0x109   : > { %v1693_v36 = vpop.f32.mrf.mxu0  ;;  %v1765_v37 = vpop.f32.mrf.mxu1 }
 0x10a   : > { %v822_v24 = vadd.f32 %v1692_v4, %v2324_v53 }
 0x10b   : > { %v1694_v38 = vpop.f32.mrf.mxu0  ;;  %v1766_v39 = vpop.f32.mrf.mxu1 }
 0x10c   : > { %v2311_v40 = vadd.f32 %v1766_v39, %v1765_v37  ;;  %v1695_v11 = vadd.f32 %v1694_v38, %v1693_v36 }
 0x10d   : > { %v1696_v41 = vpop.f32.mrf.mxu0  ;;  %v2313_v42 = vpop.f32.mrf.mxu1 }
 0x10e   : > { %v825_v33 = vadd.f32 %v1695_v11, %v2324_v53 }
 0x10f   : > { %v1697_v43 = vpop.f32.mrf.mxu0  ;;  %v2315_v44 = vpop.f32.mrf.mxu1 }
 0x110   : > { %v1698_v0 = vadd.f32 %v1697_v43, %v1696_v41 }
 0x111   : > { %v1699_v45 = vpop.f32.mrf.mxu0  ;;  %v2317_v46 = vpop.f32.mrf.mxu1 }
 0x112   : > { %v830_v18 = vadd.f32 %v1698_v0, %v2324_v53 }
 0x113   : > { %v1700_v48 = vpop.f32.mrf.mxu0  ;;  %v2319_v49 = vpop.f32.mrf.mxu1 }
 0x114   : > { %v1701_v7 = vadd.f32 %v1700_v48, %v1699_v45 }
 0x115   : > { %v1702_v52 = vpop.f32.mrf.mxu0  ;;  %v1813_v54 = vpop.f32.mrf.mxu1 }
 0x116   : > { %v975_v59 = vadd.f32 %v1813_v54, %v814_v56  ;;  %v833_v26 = vadd.f32 %v1701_v7, %v2324_v53 }
 0x117   : > { %v1703_v57 = vpop.f32.mrf.mxu0  ;;  %v966_v58 = vpop.f32.mrf.mxu1 }
 0x118   : > { %v967_v1 = vadd.f32 %v966_v58, %v806_v60  ;;  %v1095_v8 = vmax.f32 %v975_v59, 0.0  ;;  %v1704_v34 = vadd.f32 %v1703_v57, %v1702_v52 }
 0x119   : > { %v1705_v62 = vpop.f32.mrf.mxu0  ;;  %v1814_v63 = vpop.f32.mrf.mxu1 }
 0x11a   : > { %v978_v2 = vadd.f32 %v1814_v63, %v817_v61  ;;  %v1093_v14 = vmax.f32 %v967_v1, 0.0  ;;  %v838_v59 = vadd.f32 %v1704_v34, %v2324_v53 }
 0x11b   : > { %v1706_v5 = vpop.f32.mrf.mxu0  ;;  %v969_v6 = vpop.f32.mrf.mxu1 }
 0x11c   : > { %v1096_v9 = vmax.f32 %v978_v2, 0.0  ;;  %v970_v10 = vadd.f32 %v969_v6, %v809_v3  ;;  %v1707_v45 = vadd.f32 %v1706_v5, %v1705_v62 }
 0x11d   : > { %v1708_v12 = vpop.f32.mrf.mxu0  ;;  %v1817_v13 = vpop.f32.mrf.mxu1 }
 0x11e   : > { %v1575_v16 = vpack.c.bf16 %v1096_v9, %v1095_v8  ;;  %v1094_v17 = vmax.f32 %v970_v10, 0.0  ;;  %v991_v23 = vadd.f32 %v1817_v13, %v830_v18  ;;  %v841_v1 = vadd.f32 %v1707_v45, %v2324_v53 }
 0x11f   : > { %v1709_v19 = vpop.f32.mrf.mxu0  ;;  %v982_v21 = vpop.f32.mrf.mxu1 }
 0x120   : > { %1647 = vst [vmem:[%s2334_s4 + $0x8] sm:$0xff] %v1575_v16   ;;  %v1570_v22 = vpack.c.bf16 %v1094_v17, %v1093_v14  ;;  %v1710_v29 = vadd.f32 %v1709_v19, %v1708_v12  ;;  %v983_v31 = vadd.f32 %v982_v21, %v822_v24  ;;  %v1099_v38 = vmax.f32 %v991_v23, 0.0 }
 0x121   : > { %v1711_v27 = vpop.f32.mrf.mxu0  ;;  %v1818_v28 = vpop.f32.mrf.mxu1 }
 0x122   : > { %1571 = vst [vmem:[%s2334_s4] sm:$0xff] %v1570_v22   ;;  %v994_v32 = vadd.f32 %v1818_v28, %v833_v26  ;;  %v1097_v50 = vmax.f32 %v983_v31, 0.0  ;;  %v846_v55 = vadd.f32 %v1710_v29, %v2324_v53 }
 0x123   : > { %v1712_v36 = vpop.f32.mrf.mxu0  ;;  %v985_v37 = vpop.f32.mrf.mxu1 }
 0x124   : > { %v1100_v39 = vmax.f32 %v994_v32, 0.0  ;;  %v1713_v41 = vadd.f32 %v1712_v36, %v1711_v27  ;;  %v986_v43 = vadd.f32 %v985_v37, %v825_v33 }
 0x125   : > { %v1714_v47 = vpop.f32.mrf.mxu0  ;;  %v1821_v48 = vpop.f32.mrf.mxu1 }
 0x126   : > { %v1585_v51 = vpack.c.bf16 %v1100_v39, %v1099_v38  ;;  %v1098_v54 = vmax.f32 %v986_v43, 0.0  ;;  %v1007_v57 = vadd.f32 %v1821_v48, %v846_v55  ;;  %v849_v60 = vadd.f32 %v1713_v41, %v2324_v53 }
 0x127   : > { %v1715_v56 = vpop.f32.mrf.mxu0  ;;  %v998_v58 = vpop.f32.mrf.mxu1 }
 0x128   : > { %1649 = vst [vmem:[%s2334_s4 + $0x18] sm:$0xff] %v1585_v51   ;;  %v1580_v52 = vpack.c.bf16 %v1098_v54, %v1097_v50  ;;  %v999_v62 = vadd.f32 %v998_v58, %v838_v59  ;;  %v1103_v4 = vmax.f32 %v1007_v57, 0.0  ;;  %v1716_v5 = vadd.f32 %v1715_v56, %v1714_v47 }
 0x129   : > { %v1717_v61 = vpop.f32.mrf.mxu0  ;;  %v1822_v63 = vpop.f32.mrf.mxu1 }
 0x12a   : > { %1648 = vst [vmem:[%s2334_s4 + $0x10] sm:$0xff] %v1580_v52   ;;  %v1010_v0 = vadd.f32 %v1822_v63, %v849_v60  ;;  %v1101_v10 = vmax.f32 %v999_v62, 0.0  ;;  %v854_v19 = vadd.f32 %v1716_v5, %v2324_v53 }
 0x12b   : > { %v1718_v2 = vpop.f32.mrf.mxu0  ;;  %v1001_v3 = vpop.f32.mrf.mxu1 }
 0x12c   : > { %v1104_v6 = vmax.f32 %v1010_v0, 0.0  ;;  %v1002_v7 = vadd.f32 %v1001_v3, %v841_v1  ;;  %v1719_v12 = vadd.f32 %v1718_v2, %v1717_v61 }
 0x12d   : > { %v1720_v8 = vpop.f32.mrf.mxu0  ;;  %v1825_v9 = vpop.f32.mrf.mxu1 }
 0x12e   : > { %v1595_v11 = vpack.c.bf16 %v1104_v6, %v1103_v4  ;;  %v1102_v13 = vmax.f32 %v1002_v7, 0.0  ;;  %v857_v26 = vadd.f32 %v1719_v12, %v2324_v53 }
 0x12f   : > { %v1721_v14 = vpop.f32.mrf.mxu0  ;;  %v1014_v16 = vpop.f32.mrf.mxu1 }
 0x130   : > { %1651 = vst [vmem:[%s2334_s4 + $0x28] sm:$0xff] %v1595_v11   ;;  %v1590_v17 = vpack.c.bf16 %v1102_v13, %v1101_v10  ;;  %v1722_v18 = vadd.f32 %v1721_v14, %v1720_v8  ;;  %v1015_v24 = vadd.f32 %v1014_v16, %v854_v19 }
 0x131   : > { %v1723_v21 = vpop.f32.mrf.mxu0  ;;  %v1826_v22 = vpop.f32.mrf.mxu1 }
 0x132   : > { %1650 = vst [vmem:[%s2334_s4 + $0x20] sm:$0xff] %v1590_v17   ;;  %v862_v23 = vadd.f32 %v1722_v18, %v2324_v53  ;;  %v1105_v36 = vmax.f32 %v1015_v24, 0.0  ;;  %v910_v17 = vadd.f32 %v2305_v25, %v2324_v53  ;;  %v913_v24 = vadd.f32 %v2307_v30, %v2324_v53 }
 0x133   : > { %v1724_v27 = vpop.f32.mrf.mxu0  ;;  %v1017_v28 = vpop.f32.mrf.mxu1  ;;  %v905_v30 = vadd.f32 %v2303_v20, %v2324_v53 }
 0x134   : > { %v1725_v29 = vadd.f32 %v1724_v27, %v1723_v21  ;;  %v1018_v31 = vadd.f32 %v1017_v28, %v857_v26  ;;  %v1023_v34 = vadd.f32 %v1825_v9, %v862_v23  ;;  %v1770_v26 = vadd.f32 %v2315_v44, %v2313_v42 }
 0x135   : > { %v1726_v32 = vpop.f32.mrf.mxu0  ;;  %v1829_v33 = vpop.f32.mrf.mxu1  ;;  %v902_v27 = vadd.f32 %v2301_v15, %v2324_v53 }
 0x136   : > { %v865_v37 = vadd.f32 %v1725_v29, %v2324_v53  ;;  %v1106_v38 = vmax.f32 %v1018_v31, 0.0  ;;  %v1107_v51 = vmax.f32 %v1023_v34, 0.0  ;;  %v1773_v34 = vadd.f32 %v2319_v49, %v2317_v46 }
 0x137   : > { %v1727_v39 = vpop.f32.mrf.mxu0  ;;  %v1030_v41 = vpop.f32.mrf.mxu1  ;;  %v926_v46 = vadd.f32 %v1770_v26, %v2324_v53 }
 0x138   : > { %v1026_v43 = vadd.f32 %v1826_v22, %v865_v37  ;;  %v1600_v45 = vpack.c.bf16 %v1106_v38, %v1105_v36  ;;  %v1728_v47 = vadd.f32 %v1727_v39, %v1726_v32 }
 0x139   : > { %v1729_v48 = vpop.f32.mrf.mxu0  ;;  %v1830_v50 = vpop.f32.mrf.mxu1 }
 0x13a   : > { %v1108_v54 = vmax.f32 %v1026_v43, 0.0  ;;  %1652 = vst [vmem:[%s2334_s4 + $0x30] sm:$0xff] %v1600_v45   ;;  %v870_v55 = vadd.f32 %v1728_v47, %v2324_v53 }
 0x13b   : > { %v1730_v56 = vpop.f32.mrf.mxu0  ;;  %v1033_v58 = vpop.f32.mrf.mxu1 }
 0x13c   : > { %v1605_v52 = vpack.c.bf16 %v1108_v54, %v1107_v51  ;;  %v1731_v57 = vadd.f32 %v1730_v56, %v1729_v48  ;;  %v1031_v61 = vadd.f32 %v1030_v41, %v870_v55 }
 0x13d   : > { %v1732_v59 = vpop.f32.mrf.mxu0  ;;  %v2355_v60 = vpop.f32.mrf.mxu1 }
 0x13e   : > { %1653 = vst [vmem:[%s2334_s4 + $0x38] sm:$0xff] %v1605_v52   ;;  %v873_v63 = vadd.f32 %v1731_v57, %v2324_v53  ;;  %v1109_v5 = vmax.f32 %v1031_v61, 0.0  ;;  %v929_v52 = vadd.f32 %v1773_v34, %v2324_v53 }
 0x13f   : > { %v1733_v62 = vpop.f32.mrf.mxu0  ;;  %v1046_v0 = vpop.f32.mrf.mxu1 }
 0x140   : > { %v1034_v1 = vadd.f32 %v1033_v58, %v873_v63  ;;  %v1734_v2 = vadd.f32 %v1733_v62, %v1732_v59  ;;  %v918_v59 = vadd.f32 %v2309_v35, %v2324_v53 }
 0x141   : > { %v1735_v3 = vpop.f32.mrf.mxu0  ;;  %v2359_v4 = vpop.f32.mrf.mxu1 }
 0x142   : > { %v1110_v6 = vmax.f32 %v1034_v1, 0.0  ;;  %v878_v7 = vadd.f32 %v1734_v2, %v2324_v53 }
 0x143   : > { %v1736_v8 = vpop.f32.mrf.mxu0  ;;  %v1049_v9 = vpop.f32.mrf.mxu1 }
 0x144   : > { %v1610_v10 = vpack.c.bf16 %v1110_v6, %v1109_v5  ;;  %v1737_v11 = vadd.f32 %v1736_v8, %v1735_v3  ;;  %v1039_v14 = vadd.f32 %v1829_v33, %v878_v7  ;;  %v921_v6 = vadd.f32 %v2311_v40, %v2324_v53 }
 0x145   : > { %v1738_v12 = vpop.f32.mrf.mxu0  ;;  %v1837_v13 = vpop.f32.mrf.mxu1 }
 0x146   : > { %1654 = vst [vmem:[%s2334_s4 + $0x40] sm:$0xff] %v1610_v10   ;;  %v881_v16 = vadd.f32 %v1737_v11, %v2324_v53  ;;  %v1071_v22 = vadd.f32 %v1837_v13, %v910_v17  ;;  %v1111_v31 = vmax.f32 %v1039_v14, 0.0 }
 0x147   : > { %v1739_v18 = vpop.f32.mrf.mxu0  ;;  %v1062_v19 = vpop.f32.mrf.mxu1 }
 0x148   : > { %v1042_v21 = vadd.f32 %v1830_v50, %v881_v16  ;;  %v1740_v23 = vadd.f32 %v1739_v18, %v1738_v12  ;;  %v1063_v36 = vadd.f32 %v1062_v19, %v902_v27  ;;  %v1119_v15 = vmax.f32 %v1071_v22, 0.0 }
 0x149   : > { %v1741_v28 = vpop.f32.mrf.mxu0  ;;  %v1838_v29 = vpop.f32.mrf.mxu1 }
 0x14a   : > { %v1112_v32 = vmax.f32 %v1042_v21, 0.0  ;;  %v886_v25 = vadd.f32 %v1740_v23, %v2324_v53  ;;  %v1074_v33 = vadd.f32 %v1838_v29, %v913_v24  ;;  %v1117_v49 = vmax.f32 %v1063_v36, 0.0 }
 0x14b   : > { %v1742_v37 = vpop.f32.mrf.mxu0  ;;  %v1065_v42 = vpop.f32.mrf.mxu1 }
 0x14c   : > { %v1615_v44 = vpack.c.bf16 %v1112_v32, %v1111_v31  ;;  %v1120_v38 = vmax.f32 %v1074_v33, 0.0  ;;  %v1743_v39 = vadd.f32 %v1742_v37, %v1741_v28  ;;  %v1066_v41 = vadd.f32 %v1065_v42, %v905_v30 }
 0x14d   : > { %v1744_v43 = vpop.f32.mrf.mxu0  ;;  %v1841_v45 = vpop.f32.mrf.mxu1  ;;  %v1047_v47 = vadd.f32 %v1046_v0, %v886_v25 }
 0x14e   : > { %1655 = vst [vmem:[%s2334_s4 + $0x48] sm:$0xff] %v1615_v44   ;;  %v1635_v48 = vpack.c.bf16 %v1120_v38, %v1119_v15  ;;  %v889_v50 = vadd.f32 %v1743_v39, %v2324_v53  ;;  %v1118_v51 = vmax.f32 %v1066_v41, 0.0  ;;  %v1087_v56 = vadd.f32 %v1841_v45, %v926_v46 }
 0x14f   : > { %v1745_v20 = vpop.f32.mrf.mxu0  ;;  %v1078_v54 = vpop.f32.mrf.mxu1  ;;  %v1113_v62 = vmax.f32 %v1047_v47, 0.0 }
 0x150   : > { %1659 = vst [vmem:[%s2334_s4 + $0x68] sm:$0xff] %v1635_v48   ;;  %v1050_v55 = vadd.f32 %v1049_v9, %v889_v50  ;;  %v1746_v58 = vadd.f32 %v1745_v20, %v1744_v43  ;;  %v1630_v57 = vpack.c.bf16 %v1118_v51, %v1117_v49  ;;  %v1079_v3 = vadd.f32 %v1078_v54, %v918_v59 }
 0x151   : > { %v1747_v61 = vpop.f32.mrf.mxu0  ;;  %v1842_v63 = vpop.f32.mrf.mxu1  ;;  %v1123_v35 = vmax.f32 %v1087_v56, 0.0 }
 0x152   : > { %v1114_v0 = vmax.f32 %v1050_v55, 0.0  ;;  %v894_v1 = vadd.f32 %v1746_v58, %v2324_v53  ;;  %v1090_v2 = vadd.f32 %v1842_v63, %v929_v52  ;;  %1658 = vst [vmem:[%s2334_s4 + $0x60] sm:$0xff] %v1630_v57   ;;  %v1121_v16 = vmax.f32 %v1079_v3, 0.0 }
 0x153   : > { %v1748_v5 = vpop.f32.mrf.mxu0  ;;  %v1081_v7 = vpop.f32.mrf.mxu1 }
 0x154   : > { %v1620_v8 = vpack.c.bf16 %v1114_v0, %v1113_v62  ;;  %v1124_v9 = vmax.f32 %v1090_v2, 0.0  ;;  %v1749_v10 = vadd.f32 %v1748_v5, %v1747_v61  ;;  %v1082_v11 = vadd.f32 %v1081_v7, %v921_v6 }
 0x155   : > { %v1055_v12 = vadd.f32 %v2355_v60, %v894_v1 }
 0x156   : > { %1656 = vst [vmem:[%s2334_s4 + $0x50] sm:$0xff] %v1620_v8   ;;  %v1645_v13 = vpack.c.bf16 %v1124_v9, %v1123_v35  ;;  %v897_v14 = vadd.f32 %v1749_v10, %v2324_v53  ;;  %v1122_v17 = vmax.f32 %v1082_v11, 0.0 }
 0x157   : > { %v1115_v19 = vmax.f32 %v1055_v12, 0.0 }
 0x158   : > { %1661 = vst [vmem:[%s2334_s4 + $0x78] sm:$0xff] %v1645_v13   ;;  %v1058_v40 = vadd.f32 %v2359_v4, %v897_v14  ;;  %v1640_v18 = vpack.c.bf16 %v1122_v17, %v1121_v16 }
 0x15a   : > { %v1116_v21 = vmax.f32 %v1058_v40, 0.0  ;;  %1660 = vst [vmem:[%s2334_s4 + $0x70] sm:$0xff] %v1640_v18  }
 0x15c   : > { %v1625_v53 = vpack.c.bf16 %v1116_v21, %v1115_v19 }
 0x15e   : > { %1657 = vst [vmem:[%s2334_s4 + $0x58] sm:$0xff] %v1625_v53  }
 0x15f   : > { %2018 = shalt.err (!%p2015_p5)
}
 0x160   : > { %s2019_s21 = scalar_lea.hbm %s2399_s9, 2048  ;;  %s2023_s5 = scalar_lea.hbm %s2454_s3, 16384 }
 0x161   : > { %p2020_p6 = scmp.ne.s32.totalorder %s2399_s9, %s2019_s21  ;;  %p2024_p10 = scmp.lt.s32.totalorder %s2399_s9, %s2454_s3 }
 0x162   : > { %p2025_p11 = scmp.lt.s32.totalorder %s2023_s5, %s2019_s21 }
 0x163   : > { %p2021_p7 = pnand %p2020_p6, %p2147_p4 }
 0x164   : > { %p2026_p12 = por %p2025_p11, %p2024_p10 }
 0x165   : > { %p2022_p9 = pneg %p2021_p7 }
 0x167   : > { %p2027_p13 = pnand %p2026_p12, %p2022_p9 }
 0x169   : > { %2030 = shalt.err (!%p2027_p13)
}
 0x16a   : > { %s2085_s30 = smov 64   ;;  %s2086_s4 = smov 4  }
 0x16b   : > { %1860 = dma.vmem_to_hbm [thread:$0]  (%p2147_p4), %s2401_s6, 2048, %s2399_s9, %s2406_s10, %s2085_s30, %s2085_s30, %s2086_s4  }
 0x16c PF: > { %p1866_p0 = scmp.ge.s32.totalorder %s2081_s17, 2  ;;  %s1315_s28 = sand.u32 1, %s2061_s12  }
 0x16d   : > { %s1316_s7 = scalar_lea.sflag [#allocation3], %s1315_s28 }
 0x16e   : > { %p1863_p1 = pnand %p1866_p0, %p2154_p8 }
 0x170   : > { %p1864_p2 = pneg %p1863_p1 }
 0x172   : > { %2056 = dma.done.wait (%p1864_p2), %s1316_s7, 2048  }
 0x173   : > { %2058 = vsyncadd (%p1864_p2), %s1316_s7, 4294965248  ;;  %s16_s17 = sadd.s32 1, %s2081_s17   ;;  %s2457_s12 = smov %s2065_s13 }
 0x174   : > { %p13_p3 = scmp.ge.s32.totalorder %s16_s17, 10   ;;  %s2458_s13 = smov %s2069_s14 }
 0x175   : > { %s2459_s14 = smov %s2160_s25  ;;  %s2460_s15 = smov %s2077_s16 }
 0x176   : > { %s2461_s16 = smov %s2463_s20  ;;  %15 = sbr.rel (!%p13_p3) target bundleno = 4 (0x4), region = 73 }
 0x17b   :  { %1321 = vsyncpa [#allocation3], 1 }
 0x17c   :  { %1323 = vsyncpa [#allocation3 + $0x1], 1 }

</bundles_post_ra>
